<compile_context>
chip_gen: v7x
topology: tpu7x:2x2x1
jax: 0.10.0
libtpu: 0.0.40
codegen_flags: <defaults>
</compile_context>

<pallas_src>
import numpy as np
import jax
import jax.numpy as jnp
from jax.experimental import pallas as pl
from jax.experimental.pallas import tpu as pltpu


def _round_up(x, m):
    return (x + m - 1) // m * m


def _choose_tm(B, tm_max):
    """Pick a batch tile: sublane-aligned, >= 2 grid steps when possible."""
    if B <= 8:
        return B  # single (possibly partial) tile equal to the full batch dim
    # Aim for at least 2 grid steps so v7x's two TensorCores both get work.
    return min(tm_max, _round_up(pl.cdiv(B, 2), 8))


# ---------------------------------------------------------------------------
# Fused MLP kernel: o = relu(x @ W1 + b1) @ W2 + b2
# ---------------------------------------------------------------------------
def _mlp_kernel(x_ref, w1_ref, b1_ref, w2_ref, b2_ref, o_ref):
    w2 = w2_ref[...]
    h = jnp.dot(x_ref[...], w1_ref[...], preferred_element_type=jnp.float32)
    h = jnp.maximum(h + b1_ref[...], 0.0)          # bias add + ReLU in f32 (VPU)
    y = jnp.dot(h.astype(w2.dtype), w2, preferred_element_type=jnp.float32)
    o_ref[...] = (y + b2_ref[...]).astype(o_ref.dtype)


def mlp_forward(x, w1, b1, w2, b2, *, tm_max=1024, use_bf16_mxu=False):
    """x: (B, D_in); w1: (D_in, H); b1: (H,); w2: (H, H); b2: (H,)."""
    B, d_in = x.shape
    assert w1.shape[0] == d_in
    H = w1.shape[1]
    assert w2.shape == (H, H) and b1.shape == (H,) and b2.shape == (H,)

    tm = _choose_tm(B, tm_max)

    if use_bf16_mxu:
        # bf16 MXU operands (v5e: avoids multi-pass f32 matmul; v6e/v7x: fewer
        # HBM bytes for x). Accumulation stays f32 via preferred_element_type.
        x_in = x.astype(jnp.bfloat16)
        w1_in = w1.astype(jnp.bfloat16)
        w2_in = w2.astype(jnp.bfloat16)
    else:
        x_in, w1_in, w2_in = x, w1, w2

    b1_2d = b1.reshape(1, H)
    b2_2d = b2.reshape(1, H)

    out = pl.pallas_call(
        _mlp_kernel,
        out_shape=jax.ShapeDtypeStruct((B, H), x.dtype),
        grid_spec=pltpu.PrefetchScalarGridSpec(
            num_scalar_prefetch=0,
            grid=(pl.cdiv(B, tm),),            # ragged last block handled by Pallas
            in_specs=[
                pl.BlockSpec((tm, d_in), lambda i: (i, 0)),   # x tile
                pl.BlockSpec((d_in, H), lambda i: (0, 0)),    # W1 (resident)
                pl.BlockSpec((1, H), lambda i: (0, 0)),       # b1
                pl.BlockSpec((H, H), lambda i: (0, 0)),       # W2 (resident)
                pl.BlockSpec((1, H), lambda i: (0, 0)),       # b2
            ],
            out_specs=pl.BlockSpec((tm, H), lambda i: (i, 0)),  # lane-dense store
        ),
        compiler_params=pltpu.CompilerParams(
            dimension_semantics=("parallel",)),
    )(x_in, w1_in, b1_2d, w2_in, b2_2d)

    return out


# ---------------------------------------------------------------------------
# Pure-JAX reference (same semantics as the PyTorch module)
# ---------------------------------------------------------------------------
def mlp_ref(x, w1, b1, w2, b2):
    h = jnp.maximum(jnp.dot(x, w1) + b1, 0.0)
    return jnp.dot(h, w2) + b2


# ---------------------------------------------------------------------------
# Deterministic synthetic parameters (nn.Linear semantics, stored as (in, out))
# ---------------------------------------------------------------------------
def init_params(key, input_dim, hidden_dim):
    k1, k2, k3, k4 = jax.random.split(key, 4)
    w1 = 0.05 * jax.random.normal(k1, (input_dim, hidden_dim), jnp.float32)
    b1 = 0.02 * jax.random.normal(k2, (hidden_dim,), jnp.float32)
    w2 = 0.05 * jax.random.normal(k3, (hidden_dim, hidden_dim), jnp.float32)
    b2 = 0.02 * jax.random.normal(k4, (hidden_dim,), jnp.float32)
    return w1, b1, w2, b2


if __name__ == "__main__":
    input_dim, hidden_dim = 32, 128      # module defaults

    key = jax.random.PRNGKey(0)
    kx, kp, kx2 = jax.random.split(key, 3)
    w1, b1, w2, b2 = init_params(kp, input_dim, hidden_dim)

    fwd = jax.jit(mlp_forward, static_argnames=("tm_max", "use_bf16_mxu"))

    # Small batch: single partial tile (tm = B = 4).
    x = jax.random.normal(kx, (4, input_dim), jnp.float32)
    y = fwd(x, w1, b1, w2, b2)
    jax.block_until_ready(y)
    np.testing.assert_allclose(np.asarray(y),
                               np.asarray(mlp_ref(x, w1, b1, w2, b2)),
                               rtol=5e-3, atol=5e-3)

    # Ragged batch: 2 grid steps with a partial last block (exercises cdiv grid).
    x2 = jax.random.normal(kx2, (20, input_dim), jnp.float32)
    y2 = fwd(x2, w1, b1, w2, b2)
    jax.block_until_ready(y2)
    np.testing.assert_allclose(np.asarray(y2),
                               np.asarray(mlp_ref(x2, w1, b1, w2, b2)),
                               rtol=5e-3, atol=5e-3)

    print("KERNEL_OK")
</pallas_src>

<mosaic_0001>
module attributes {stable_mosaic.version = 11 : i64} {
  func.func @_mlp_kernel(%arg0: i32, %arg1: memref<4x32xf32, #tpu.memory_space<vmem>>, %arg2: memref<32x128xf32, #tpu.memory_space<vmem>>, %arg3: memref<1x128xf32, #tpu.memory_space<vmem>>, %arg4: memref<128x128xf32, #tpu.memory_space<vmem>>, %arg5: memref<1x128xf32, #tpu.memory_space<vmem>>, %arg6: memref<4x128xf32, #tpu.memory_space<vmem>>) attributes {dimension_semantics = [#tpu.dimension_semantics<parallel>], iteration_bounds = array<i64: 1>, scalar_prefetch = 0 : i64, scratch_operands = 0 : i64, tpu.core_type = #tpu.core_type<tc>, window_params = [{transform_indices = @transform_0, window_bounds = array<i64: 4, 32>}, {pipeline_mode = #tpu.pipeline_mode<synchronous>, transform_indices = @transform_1, window_bounds = array<i64: 32, 128>}, {pipeline_mode = #tpu.pipeline_mode<synchronous>, transform_indices = @transform_2, window_bounds = array<i64: 1, 128>}, {pipeline_mode = #tpu.pipeline_mode<synchronous>, transform_indices = @transform_3, window_bounds = array<i64: 128, 128>}, {pipeline_mode = #tpu.pipeline_mode<synchronous>, transform_indices = @transform_4, window_bounds = array<i64: 1, 128>}, {transform_indices = @transform_5, window_bounds = array<i64: 4, 128>}]} {
    %c0 = arith.constant 0 : index
    %c0_0 = arith.constant 0 : index
    %0 = vector.load %arg4[%c0, %c0_0] : memref<128x128xf32, #tpu.memory_space<vmem>>, vector<128x128xf32>
    %c0_1 = arith.constant 0 : index
    %c0_2 = arith.constant 0 : index
    %1 = vector.load %arg1[%c0_1, %c0_2] : memref<4x32xf32, #tpu.memory_space<vmem>>, vector<4x32xf32>
    %c0_3 = arith.constant 0 : index
    %c0_4 = arith.constant 0 : index
    %2 = vector.load %arg2[%c0_3, %c0_4] : memref<32x128xf32, #tpu.memory_space<vmem>>, vector<32x128xf32>
    %cst = arith.constant dense<0.000000e+00> : vector<4x128xf32>
    %3 = tpu.matmul %1, %2, %cst {dimension_numbers = #tpu.dot_dimension_numbers<[1], [0], [0], [1], [0, 0, 1, 1], [], []>} : vector<4x32xf32>, vector<32x128xf32>, vector<4x128xf32> -> vector<4x128xf32>
    %c0_5 = arith.constant 0 : index
    %c0_6 = arith.constant 0 : index
    %4 = vector.load %arg3[%c0_5, %c0_6] : memref<1x128xf32, #tpu.memory_space<vmem>>, vector<1x128xf32>
    %5 = vector.broadcast %4 : vector<1x128xf32> to vector<4x128xf32>
    %6 = arith.addf %3, %5 : vector<4x128xf32>
    %cst_7 = arith.constant 0.000000e+00 : f32
    %7 = vector.broadcast %cst_7 : f32 to vector<4x128xf32>
    %8 = arith.maximumf %6, %7 : vector<4x128xf32>
    %cst_8 = arith.constant dense<0.000000e+00> : vector<4x128xf32>
    %9 = tpu.matmul %8, %0, %cst_8 {dimension_numbers = #tpu.dot_dimension_numbers<[1], [0], [0], [1], [0, 0, 1, 1], [], []>} : vector<4x128xf32>, vector<128x128xf32>, vector<4x128xf32> -> vector<4x128xf32>
    %c0_9 = arith.constant 0 : index
    %c0_10 = arith.constant 0 : index
    %10 = vector.load %arg5[%c0_9, %c0_10] : memref<1x128xf32, #tpu.memory_space<vmem>>, vector<1x128xf32>
    %11 = vector.broadcast %10 : vector<1x128xf32> to vector<4x128xf32>
    %12 = arith.addf %9, %11 : vector<4x128xf32>
    %c0_11 = arith.constant 0 : index
    %c0_12 = arith.constant 0 : index
    %13 = vector.load %arg6[%c0_11, %c0_12] : memref<4x128xf32, #tpu.memory_space<vmem>>, vector<4x128xf32>
    tpu.vector_store %arg6[%c0_11, %c0_12], %12 {strides = array<i32>} : memref<4x128xf32, #tpu.memory_space<vmem>>, vector<4x128xf32>,
    return
  }
  func.func @transform_0(%arg0: i32) -> (i32, i32) {
    %c0_i32 = arith.constant 0 : i32
    %c0_i32_0 = arith.constant 0 : i32
    return %arg0, %c0_i32 : i32, i32
  }
  func.func @transform_1(%arg0: i32) -> (i32, i32) {
    %c0_i32 = arith.constant 0 : i32
    %c0_i32_0 = arith.constant 0 : i32
    %c0_i32_1 = arith.constant 0 : i32
    return %c0_i32, %c0_i32_0 : i32, i32
  }
  func.func @transform_2(%arg0: i32) -> (i32, i32) {
    %c0_i32 = arith.constant 0 : i32
    %c0_i32_0 = arith.constant 0 : i32
    %c0_i32_1 = arith.constant 0 : i32
    return %c0_i32, %c0_i32_0 : i32, i32
  }
  func.func @transform_3(%arg0: i32) -> (i32, i32) {
    %c0_i32 = arith.constant 0 : i32
    %c0_i32_0 = arith.constant 0 : i32
    %c0_i32_1 = arith.constant 0 : i32
    return %c0_i32, %c0_i32_0 : i32, i32
  }
  func.func @transform_4(%arg0: i32) -> (i32, i32) {
    %c0_i32 = arith.constant 0 : i32
    %c0_i32_0 = arith.constant 0 : i32
    %c0_i32_1 = arith.constant 0 : i32
    return %c0_i32, %c0_i32_0 : i32, i32
  }
  func.func @transform_5(%arg0: i32) -> (i32, i32) {
    %c0_i32 = arith.constant 0 : i32
    %c0_i32_0 = arith.constant 0 : i32
    return %arg0, %c0_i32 : i32, i32
  }
}

</mosaic_0001>

<bundles_post_ra>
// kernel: mlp_forward.1
= control target key start
LH: loop header
LB: loop body
LE: loop exit
PB: predicated region body
PF: predicated region fallthrough
CT: control target
= control target key end

     0   :  { %10 = vsyncpa [#allocation3], 0  ;;  %s510_s0 = inlined_call_operand.vmem [shape: f32[4,32], index: 0, kind: input, shape index: {}]   ;;  %s511_s1 = inlined_call_operand.hbm [shape: f32[32,128], index: 1, kind: input, shape index: {}]   ;;  %s512_s2 = inlined_call_operand.vmem [shape: f32[1,128], index: 2, kind: input, shape index: {}]   ;;  %s513_s3 = inlined_call_operand.hbm [shape: f32[128,128], index: 3, kind: input, shape index: {}]   ;;  %s514_s4 = inlined_call_operand.vmem [shape: f32[1,128], index: 4, kind: input, shape index: {}]   ;;  %s515_s5 = inlined_call_operand.hbm [shape: f32[4,128], index: 5, kind: output, shape index: {}]  }
   0x1   :  { %11 = vsyncpa [#allocation6], 0 }
   0x2   :  { %12 = vsyncpa [#allocation4], 0  ;;  %s427_s18 = smov [#allocation2]   ;;  %s355_s22 = scalar_lea.hbm %s511_s1, 512 }
   0x3   :  { %s20_s19 = sshll.u32 %s427_s18, 4  ;;  %p356_p0 = scmp.ne.s32.totalorder %s511_s1, %s355_s22  ;;  %s21_s19 = int_to_ptr.vmem [resolvable:$true] %s20_s19 }
   0x4   :  { %p359_p1 = scmp.lt.u32.totalorder %s355_s22, %s511_s1 }
   0x6   :  { %p361_p2 = pnand %p359_p1, %p356_p0 }
   0x8   :  { %364 = shalt.err (!%p361_p2)
}
   0x9   :  { %s365_s27 = scalar_lea.vmem %s21_s19, 512  ;;  %p370_p4 = scmp.lt.s32.totalorder %s21_s19, %s21_s19 }
   0xa   :  { %p366_p3 = scmp.ne.s32.totalorder %s21_s19, %s365_s27  ;;  %p371_p5 = scmp.lt.s32.totalorder %s365_s27, %s365_s27 }
   0xc   :  { %p372_p6 = por %p371_p5, %p370_p4 }
   0xe   :  { %p373_p7 = pnand %p372_p6, %p366_p3 }
  0x10   :  { %376 = shalt.err (!%p373_p7)
}
  0x11   :  { %s428_s28 = smov 128   ;;  %s429_s29 = smov 8  }
  0x12   :  { %26 = dma.hbm_to_vmem [thread:$0]  %s511_s1, 512, %s21_s19, [#allocation3], %s428_s28, %s428_s28, %s429_s29  }
  0x13   :  { %s430_s7 = smov [#allocation5]   ;;  %s377_s11 = scalar_lea.hbm %s513_s3, 2048 }
  0x14   :  { %s34_s8 = sshll.u32 %s430_s7, 4  ;;  %p378_p8 = scmp.ne.s32.totalorder %s513_s3, %s377_s11  ;;  %s35_s8 = int_to_ptr.vmem [resolvable:$true] %s34_s8 }
  0x15   :  { %p381_p9 = scmp.lt.u32.totalorder %s377_s11, %s513_s3 }
  0x17   :  { %p383_p10 = pnand %p381_p9, %p378_p8 }
  0x19   :  { %386 = shalt.err (!%p383_p10)
}
  0x1a   :  { %s387_s16 = scalar_lea.vmem %s35_s8, 2048  ;;  %p392_p12 = scmp.lt.s32.totalorder %s35_s8, %s35_s8 }
  0x1b   :  { %p388_p11 = scmp.ne.s32.totalorder %s35_s8, %s387_s16  ;;  %p393_p13 = scmp.lt.s32.totalorder %s387_s16, %s387_s16 }
  0x1d   :  { %p394_p0 = por %p393_p13, %p392_p12 }
  0x1f   :  { %p395_p1 = pnand %p394_p0, %p388_p11 }
  0x21   :  { %398 = shalt.err (!%p395_p1)
}
  0x22   :  { %40 = dma.hbm_to_vmem [thread:$0]  %s513_s3, 2048, %s35_s8, [#allocation6], %s428_s28, %s428_s28, %s429_s29  }
  0x23   :  { %421 = dma.done.wait [#allocation3], 512  }
  0x24   :  { %422 = vsyncadd [#allocation3], 4294966784 }
  0x25   :  { %423 = dma.done.wait [#allocation6], 2048  }
  0x26   :  { %424 = vsyncadd [#allocation6], 4294965248  ;;  %v431_v0 = vmov 0.0|0.0   ;;  %vm432_vm0 = vmmov 0   ;;  %v433_v1 = vmov 0.0   ;;  %v66_v2 = vld [vmem:[#allocation2] sm:$0xff] }
  0x27   :  { %317 = vmatprep.subr.bf16.mxu0 %v431_v0  ;;  %279 = vmatprep.mubr.msk.f32.mxu0 %vm432_vm0, %v433_v1  ;;  %v67_v3 = vld [vmem:[#allocation2 + $0x8] sm:$0xff]  ;;  %v68_v4 = vld [vmem:[#allocation2 + $0x10] sm:$0xff]  ;;  %v69_v6 = vld [vmem:[#allocation2 + $0x18] sm:$0xff]  ;;  %vm77_vm1 = vcmask 261120   ;;  %s434_s22 = smov [#allocation7]  }
  0x28   :  { %323 = vmatprep.subr.bf16.mxu1 %v431_v0  ;;  %314 = vmatprep.mubr.msk.f32.mxu1 %vm432_vm0, %v433_v1  ;;  %v318_v5 = vpack.c.bf16 %v67_v3, %v66_v2  ;;  %v49_v7 = vld [vmem:[#allocation5] sm:$0xff]  ;;  %v50_v8 = vld [vmem:[#allocation5 + $0x8] sm:$0xff]  ;;  %v51_v9 = vld [vmem:[#allocation5 + $0x10] sm:$0xff]  ;;  %v321_v11 = vpack.c.bf16 %v69_v6, %v68_v4  ;;  %s236_s23 = sshll.u32 %s434_s22, 4  ;;  %s237_s23 = int_to_ptr.vmem [resolvable:$true] %s236_s23 }
  0x29   :  { %v52_v10 = vld [vmem:[#allocation5 + $0x18] sm:$0xff]  ;;  %v324_v12 = vpack.c.bf16 %v50_v8, %v49_v7  ;;  %v53_v14 = vld [vmem:[#allocation5 + $0x20] sm:$0xff]  ;;  %v54_v15 = vld [vmem:[#allocation5 + $0x28] sm:$0xff]  ;;  %s399_s24 = scalar_lea.vmem %s237_s23, 64  ;;  %p404_p3 = scmp.lt.s32.totalorder %s237_s23, %s237_s23 }
  0x2a   :  { %319 = vmatpush3.bf16.msra.mxu0 %v318_v5  ;;  %v327_v13 = vpack.c.bf16 %v52_v10, %v51_v9  ;;  %v65_v16 = vld [vmem:[%s510_s0] sm:$0xf]  ;;  %v330_v17 = vpack.c.bf16 %v54_v15, %v53_v14  ;;  %v55_v18 = vld [vmem:[#allocation5 + $0x30] sm:$0xff]  ;;  %v56_v19 = vld [vmem:[#allocation5 + $0x38] sm:$0xff]  ;;  %p400_p2 = scmp.ne.s32.totalorder %s237_s23, %s399_s24  ;;  %p405_p4 = scmp.lt.s32.totalorder %s399_s24, %s399_s24 }
  0x2b   :  { %320 = vmatprep.subr.bf16.mxu0 %v431_v0  ;;  %325 = vmatpush3.bf16.msra.mxu1 %v324_v12  ;;  %v333_v20 = vpack.c.bf16 %v56_v19, %v55_v18  ;;  %v57_v21 = vld [vmem:[#allocation5 + $0x40] sm:$0xff]  ;;  %v58_v22 = vld [vmem:[#allocation5 + $0x48] sm:$0xff]  ;;  %v59_v24 = vld [vmem:[#allocation5 + $0x50] sm:$0xff] }
  0x2c   :  { %326 = vmatprep.subr.bf16.mxu1 %v431_v0  ;;  %v336_v23 = vpack.c.bf16 %v58_v22, %v57_v21  ;;  %v60_v25 = vld [vmem:[#allocation5 + $0x58] sm:$0xff]  ;;  %v61_v27 = vld [vmem:[#allocation5 + $0x60] sm:$0xff]  ;;  %v62_v28 = vld [vmem:[#allocation5 + $0x68] sm:$0xff]  ;;  %p406_p5 = por %p405_p4, %p404_p3 }
  0x2d   :  { %v339_v26 = vpack.c.bf16 %v60_v25, %v59_v24  ;;  %v342_v29 = vpack.c.bf16 %v62_v28, %v61_v27  ;;  %v63_v30 = vld [vmem:[#allocation5 + $0x70] sm:$0xff]  ;;  %v64_v31 = vld [vmem:[#allocation5 + $0x78] sm:$0xff]  ;;  %v246_v33 = vld [vmem:[%s512_s2] ss:$0 sm:$0xff] }
  0x2e   :  { %322 = vmatpush3.bf16.msra.mxu0 %v321_v11  ;;  %v345_v32 = vpack.c.bf16 %v64_v31, %v63_v30  ;;  %v248_v38 = vld [vmem:[%s514_s4] ss:$0 sm:$0xff]  ;;  %p407_p6 = pnand %p406_p5, %p400_p2 }
  0x2f   :  { %328 = vmatpush3.bf16.msra.mxu1 %v327_v13 }
  0x30   :  { %329 = vmatprep.subr.bf16.mxu1 %v431_v0 }
  0x31   :  { %280 = vmatmul.mubr.msk.f32.vlgmr.msra.gmra.mrb[0].mxu0 %vm77_vm1, %v65_v16 }
  0x33   :  { %331 = vmatpush3.bf16.msra.mxu1 %v330_v17 }
  0x34   :  { %332 = vmatprep.subr.bf16.mxu1 %v431_v0 }
  0x37   :  { %334 = vmatpush3.bf16.msra.mxu1 %v333_v20 }
  0x38   :  { %335 = vmatprep.subr.bf16.mxu1 %v431_v0 }
  0x3b   :  { %337 = vmatpush3.bf16.msra.mxu1 %v336_v23 }
  0x3c   :  { %338 = vmatprep.subr.bf16.mxu1 %v431_v0 }
  0x3f   :  { %340 = vmatpush3.bf16.msra.mxu1 %v339_v26 }
  0x40   :  { %341 = vmatprep.subr.bf16.mxu1 %v431_v0 }
  0x43   :  { %343 = vmatpush3.bf16.msra.mxu1 %v342_v29 }
  0x44   :  { %344 = vmatprep.subr.bf16.mxu1 %v431_v0 }
  0x47   :  { %346 = vmatpush3.bf16.msra.mxu1 %v345_v32 }
 0x104   :  { %v147_v34 = vpop.f32.mrb[0].mxu0 }
 0x105   :  { %v148_v35 = vadd.f32 %v246_v33, %v147_v34  ;;  %v281_v36 = vpop.f32.mrb[1].mxu0 }
 0x107   :  { %v151_v37 = vmax.f32 %v148_v35, 0.0 }
 0x109   :  { %315 = vmatmul.mubr.f32.vlgmr.msra.gmra.mrb[0].mxu1 %v151_v37 }
 0x1dc   :  { %v225_v39 = vpop.f32.mrb[0].mxu1 }
 0x1dd   :  { %v226_v40 = vadd.f32 %v248_v38, %v225_v39  ;;  %v316_v41 = vpop.f32.mrb[1].mxu1 }
 0x1df   :  { %229 = vst [vmem:[#allocation7] sm:$0xf] %v226_v40 }
 0x1e0   :  { %410 = shalt.err (!%p407_p6)
}
 0x1e1   :  { %s411_s26 = scalar_lea.hbm %s515_s5, 64 }
 0x1e2   :  { %p412_p7 = scmp.ne.s32.totalorder %s515_s5, %s411_s26  ;;  %p415_p8 = scmp.lt.u32.totalorder %s411_s26, %s515_s5 }
 0x1e4   :  { %p417_p9 = pnand %p415_p8, %p412_p7 }
 0x1e6   :  { %420 = shalt.err (!%p417_p9)
}
 0x1e7   :  { %239 = dma.vmem_to_hbm [thread:$0]  %s237_s23, 64, %s515_s5, [#allocation4]  }
 0x1e8   :  { %425 = dma.done.wait [#allocation4], 64  }
 0x1e9   :  { %426 = vsyncadd [#allocation4], 4294967232 }
 0x1ea   :  { %243 = vsyncpa [#allocation3], 1 }
 0x1eb   :  { %244 = vsyncpa [#allocation6], 1 }
 0x1ec   :  { %245 = vsyncpa [#allocation4], 1 }

</bundles_post_ra>
